<compile_context>
chip_gen: v7x
topology: tpu7x:2x2x1
jax: 0.10.0
libtpu: 0.0.40
codegen_flags: <defaults>
</compile_context>

<pallas_src>
import jax
import jax.numpy as jnp
from jax.experimental import pallas as pl
from jax.experimental.pallas import tpu as pltpu

LEAKY_SLOPE = 0.01          # PyTorch nn.LeakyReLU default negative_slope
BN_EPS = 1e-5               # PyTorch nn.BatchNorm1d default eps
LANE = 128
SUBLANE = 8
# Keep the double-buffered working set comfortably inside the smallest scoped
# VMEM default (16 MiB on v5e); also leaves large headroom on v7x (64 MiB).
VMEM_SOFT_CAP = 12 * 1024 * 1024


def mlp_kernel(x_ref, w1_ref, shift1_ref, w2_ref, b2_ref, out_ref):
    """One channel-group / one batch tile of the fused MLP.

    x_ref:      (TB, G*In)     bf16   (G channels' inputs concatenated)
    w1_ref:     (G*In, G*H)    bf16   (block-diagonal, BN scale folded in)
    shift1_ref: (1, G*H)       f32    (b1*scale + beta - mean*scale)
    w2_ref:     (G*H, OutP)    bf16   (block-diagonal, lane-padded)
    b2_ref:     (1, OutP)      f32
    out_ref:    (TB, OutP)     f32    (lane-dense packed G-channel output)
    """
    # First linear layer (all G channels at once) on the MXU, f32 accumulation.
    h = jnp.dot(x_ref[...], w1_ref[...], preferred_element_type=jnp.float32)
    h = h + shift1_ref[...]                      # bias + folded BN shift (f32)
    # Dropout(0.4): identity in eval mode.
    # LeakyReLU in f32 (element-wise math stays f32 for v5e).
    h = jnp.where(h >= 0.0, h, LEAKY_SLOPE * h)
    # Output linear layer; cast activations to bf16 only at the dot boundary.
    out = jnp.dot(h.astype(jnp.bfloat16), w2_ref[...],
                  preferred_element_type=jnp.float32) + b2_ref[...]
    out_ref[...] = out.astype(out_ref.dtype)


def _round_up(v, m):
    return -(-v // m) * m


def _block_diag_groups(w, g):
    """(Cp, A, B) per-channel matrices -> (Cp//g, g*A, g*B) block-diagonal."""
    cp, a, b = w.shape
    ng = cp // g
    wg = w.reshape(ng, g, a, b)
    eye = jnp.eye(g, dtype=w.dtype)
    # out[n, gi*A + ai, gj*B + bj] = wg[n, gi, ai, bj] * (gi == gj)
    return jnp.einsum('ngab,gh->ngahb', wg, eye).reshape(ng, g * a, g * b)


def mlp_for_many_c(x, w1, b1, gamma, beta, running_mean, running_var, w2, b2,
                   eps=BN_EPS, batch_tile=2048, group_size=None,
                   return_packed=False):
    """Run C independent MLPForOneC instances in a single pallas_call.

    x:  (C, B, In) f32
    w1: (C, In, H) f32   (stored as (in, out))
    b1, gamma, beta, running_mean, running_var: (C, H) f32
    w2: (C, H, Out) f32
    b2: (C, Out) f32
    returns (C, B, Out) f32   (or the packed (C//G, B, OutP) slab if
                               return_packed=True, with (G, Out) metadata)
    """
    C, B, In = x.shape
    H = w1.shape[2]
    Out = w2.shape[2]

    # ---- Host-side eval-mode BN fold into the first layer ------------------
    bn_scale = gamma / jnp.sqrt(running_var + eps)                    # (C, H)
    shift1 = b1 * bn_scale + beta - running_mean * bn_scale           # (C, H)
    w1_folded = w1 * bn_scale[:, None, :]                             # (C, In, H)

    # ---- Channel grouping: G channels per grid step -------------------------
    if group_size is None:
        group_size = max(1, LANE // Out) if Out < LANE else 1
    G = int(max(1, min(group_size, C)))
    Cp = _round_up(C, G)
    pad_c = Cp - C
    if pad_c:  # pad channel axis with zero params (results sliced away below)
        def _padc(a):
            return jnp.pad(a, ((0, pad_c),) + ((0, 0),) * (a.ndim - 1))
        x, w1_folded, shift1, w2, b2 = map(_padc, (x, w1_folded, shift1, w2, b2))
    ng = Cp // G
    GIn, GH, GOut = G * In, G * H, G * Out
    out_p = _round_up(GOut, LANE)            # == 128 exactly when G*Out == 128

    # ---- Block-diagonal grouped weights (bf16 MXU operands) -----------------
    w1_bd = _block_diag_groups(w1_folded, G).astype(jnp.bfloat16)  # (ng,GIn,GH)
    w2_bd = _block_diag_groups(w2, G)                              # (ng,GH,GOut)
    w2_bd = jnp.pad(w2_bd, ((0, 0), (0, 0), (0, out_p - GOut))).astype(jnp.bfloat16)
    shift1_g = shift1.reshape(ng, 1, GH)                           # f32
    b2_g = jnp.pad(b2.reshape(ng, 1, GOut),
                   ((0, 0), (0, 0), (0, out_p - GOut)))            # f32

    # x: (Cp, B, In) -> (ng, B, G*In): per batch row, concat the G channels'
    # inputs along the contraction axis (lane-dense, K = G*In).
    x_g = (x.reshape(ng, G, B, In).transpose(0, 2, 1, 3)
            .reshape(ng, B, GIn).astype(jnp.bfloat16))

    # ---- Batch tiling with explicit VMEM arithmetic -------------------------
    tb = int(min(B, batch_tile))
    if tb < B:
        tb = max(SUBLANE, (tb // SUBLANE) * SUBLANE)

    def _vmem_bytes(t):
        # double-buffered x/out tiles + (conservatively double-counted)
        # resident weight/bias blocks for one channel group.
        xb = t * GIn * 2                 # bf16 input tile
        ob = t * out_p * 4               # f32 output tile
        wb = GIn * GH * 2 + GH * out_p * 2 + GH * 4 + out_p * 4
        return 2 * (xb + ob + wb)

    while tb > SUBLANE and _vmem_bytes(tb) > VMEM_SOFT_CAP:
        tb = max(SUBLANE, (tb // 2 // SUBLANE) * SUBLANE)
    assert _vmem_bytes(tb) <= VMEM_SOFT_CAP or tb == SUBLANE, "VMEM budget"
    nb = pl.cdiv(B, tb)

    # ---- Advisory cost estimate (true flops / true bytes) --------------------
    flops = 2 * Cp * B * (In * H + H * Out)
    bytes_accessed = (x_g.size * 2                      # bf16 inputs
                      + Cp * (In * H + H * Out) * 2     # true (un-inflated) weights
                      + Cp * (H + Out) * 4              # shifts / biases
                      + Cp * B * Out * 4)               # true output
    cost = pl.CostEstimate(flops=int(flops), transcendentals=0,
                           bytes_accessed=int(bytes_accessed))

    out_packed = pl.pallas_call(
        mlp_kernel,
        out_shape=jax.ShapeDtypeStruct((ng, B, out_p), jnp.float32),
        grid=(ng, nb),   # batch-tile innermost -> group weights stay VMEM-resident
        in_specs=[
            pl.BlockSpec((None, tb, GIn), lambda g, b: (g, b, 0)),
            pl.BlockSpec((None, GIn, GH), lambda g, b: (g, 0, 0)),
            pl.BlockSpec((None, 1, GH), lambda g, b: (g, 0, 0)),
            pl.BlockSpec((None, GH, out_p), lambda g, b: (g, 0, 0)),
            pl.BlockSpec((None, 1, out_p), lambda g, b: (g, 0, 0)),
        ],
        out_specs=pl.BlockSpec((None, tb, out_p), lambda g, b: (g, b, 0)),
        compiler_params=pltpu.CompilerParams(
            # Both axes are independent work -> shard across the two
            # TensorCores on v7x; harmless on v5e/v6e.
            dimension_semantics=("parallel", "parallel")),
        cost_estimate=cost,
    )(x_g, w1_bd, shift1_g, w2_bd, b2_g)

    if return_packed:
        # Lane-dense packed layout: out_packed[g, b, gi*Out:(gi+1)*Out] is the
        # output of channel g*G + gi.  No unpack copy.
        return out_packed, (G, Out)

    out = (out_packed[..., :GOut]
           .reshape(ng, B, G, Out).transpose(0, 2, 1, 3)
           .reshape(Cp, B, Out))
    return out[:C]


def mlp_for_one_c(x, w1, b1, gamma, beta, running_mean, running_var, w2, b2,
                  eps=BN_EPS):
    """Single-instance convenience wrapper (matches the original module)."""
    out = mlp_for_many_c(x[None], w1[None], b1[None], gamma[None], beta[None],
                         running_mean[None], running_var[None], w2[None],
                         b2[None], eps=eps)
    return out[0]


def init_params(key, n_channels, input_size, hidden, output_size):
    """PyTorch-default-style init for C stacked MLPForOneC instances."""
    k1, k2, k3, k4 = jax.random.split(key, 4)
    bound1 = 1.0 / jnp.sqrt(input_size)
    w1 = jax.random.uniform(k1, (n_channels, input_size, hidden), jnp.float32,
                            -bound1, bound1)          # stored (in, out)
    b1 = jax.random.uniform(k2, (n_channels, hidden), jnp.float32,
                            -bound1, bound1)
    bound2 = 1.0 / jnp.sqrt(hidden)
    w2 = jax.random.uniform(k3, (n_channels, hidden, output_size), jnp.float32,
                            -bound2, bound2)
    b2 = jax.random.uniform(k4, (n_channels, output_size), jnp.float32,
                            -bound2, bound2)
    # BatchNorm1d defaults
    gamma = jnp.ones((n_channels, hidden), jnp.float32)
    beta = jnp.zeros((n_channels, hidden), jnp.float32)
    running_mean = jnp.zeros((n_channels, hidden), jnp.float32)
    running_var = jnp.ones((n_channels, hidden), jnp.float32)
    return w1, b1, gamma, beta, running_mean, running_var, w2, b2


def reference(x, w1, b1, gamma, beta, running_mean, running_var, w2, b2,
              eps=BN_EPS):
    """Pure-JAX f32 reference matching PyTorch eval-mode semantics."""
    h = jnp.einsum('cbi,cih->cbh', x, w1) + b1[:, None, :]
    h = ((h - running_mean[:, None, :])
         / jnp.sqrt(running_var[:, None, :] + eps)
         * gamma[:, None, :] + beta[:, None, :])
    h = jnp.where(h >= 0.0, h, LEAKY_SLOPE * h)
    return jnp.einsum('cbh,cho->cbo', h, w2) + b2[:, None, :]


if __name__ == "__main__":
    n_channels = 4     # number of fused "OneC" instances
    batch = 8
    input_size = 32
    hidden = 128       # default hidden_layers=[128]
    output_size = 16

    key = jax.random.PRNGKey(0)
    kx, kp = jax.random.split(key)
    x = jax.random.normal(kx, (n_channels, batch, input_size), jnp.float32)
    params = init_params(kp, n_channels, input_size, hidden, output_size)

    out = mlp_for_many_c(x, *params)
    out = jax.block_until_ready(out)

    ref = reference(x, *params)
    assert out.shape == (n_channels, batch, output_size)
    # bf16 matmul operands with f32 accumulation -> loose tolerance vs f32 ref.
    assert jnp.allclose(out, ref, atol=3e-2, rtol=3e-2), "mismatch vs reference"

    # Single-instance path still works.
    out1 = jax.block_until_ready(mlp_for_one_c(x[0], *(p[0] for p in params)))
    assert jnp.allclose(out1, ref[0], atol=3e-2, rtol=3e-2), "single-C mismatch"

    print("KERNEL_OK")
</pallas_src>

<mosaic_0001>
module attributes {stable_mosaic.version = 11 : i64} {
  func.func @mlp_kernel(%arg0: i32, %arg1: i32, %arg2: memref<1x8x128xbf16, #tpu.memory_space<vmem>>, %arg3: memref<1x128x512xbf16, #tpu.memory_space<vmem>>, %arg4: memref<1x1x512xf32, #tpu.memory_space<vmem>>, %arg5: memref<1x512x128xbf16, #tpu.memory_space<vmem>>, %arg6: memref<1x1x128xf32, #tpu.memory_space<vmem>>, %arg7: memref<1x8x128xf32, #tpu.memory_space<vmem>>) attributes {dimension_semantics = [#tpu.dimension_semantics<parallel>, #tpu.dimension_semantics<parallel>], iteration_bounds = array<i64: 1, 1>, scalar_prefetch = 0 : i64, scratch_operands = 0 : i64, tpu.core_type = #tpu.core_type<tc>, window_params = [{transform_indices = @transform_0, window_bounds = array<i64: 1, 8, 128>}, {transform_indices = @transform_1, window_bounds = array<i64: 1, 128, 512>}, {transform_indices = @transform_2, window_bounds = array<i64: 1, 1, 512>}, {transform_indices = @transform_3, window_bounds = array<i64: 1, 512, 128>}, {transform_indices = @transform_4, window_bounds = array<i64: 1, 1, 128>}, {transform_indices = @transform_5, window_bounds = array<i64: 1, 8, 128>}]} {
    %c0 = arith.constant 0 : index
    %c0_0 = arith.constant 0 : index
    %c0_1 = arith.constant 0 : index
    %0 = vector.load %arg2[%c0, %c0_0, %c0_1] : memref<1x8x128xbf16, #tpu.memory_space<vmem>>, vector<1x8x128xbf16>
    %1 = vector.shape_cast %0 : vector<1x8x128xbf16> to vector<8x128xbf16>
    %c0_2 = arith.constant 0 : index
    %c0_3 = arith.constant 0 : index
    %c0_4 = arith.constant 0 : index
    %2 = vector.load %arg3[%c0_2, %c0_3, %c0_4] : memref<1x128x512xbf16, #tpu.memory_space<vmem>>, vector<1x128x512xbf16>
    %3 = vector.shape_cast %2 : vector<1x128x512xbf16> to vector<128x512xbf16>
    %cst = arith.constant dense<0.000000e+00> : vector<8x512xf32>
    %4 = tpu.matmul %1, %3, %cst {dimension_numbers = #tpu.dot_dimension_numbers<[1], [0], [0], [1], [0, 0, 1, 1], [], []>} : vector<8x128xbf16>, vector<128x512xbf16>, vector<8x512xf32> -> vector<8x512xf32>
    %c0_5 = arith.constant 0 : index
    %c0_6 = arith.constant 0 : index
    %c0_7 = arith.constant 0 : index
    %5 = vector.load %arg4[%c0_5, %c0_6, %c0_7] : memref<1x1x512xf32, #tpu.memory_space<vmem>>, vector<1x1x512xf32>
    %6 = vector.shape_cast %5 : vector<1x1x512xf32> to vector<1x512xf32>
    %7 = vector.broadcast %6 : vector<1x512xf32> to vector<8x512xf32>
    %8 = arith.addf %4, %7 : vector<8x512xf32>
    %cst_8 = arith.constant 0.000000e+00 : f32
    %9 = vector.broadcast %cst_8 : f32 to vector<8x512xf32>
    %10 = arith.cmpf oge, %8, %9 : vector<8x512xf32>
    %cst_9 = arith.constant 0.00999999977 : f32
    %11 = vector.broadcast %cst_9 : f32 to vector<8x512xf32>
    %12 = arith.mulf %11, %8 : vector<8x512xf32>
    %13 = arith.select %10, %8, %12 : vector<8x512xi1>, vector<8x512xf32>
    %14 = arith.truncf %13 : vector<8x512xf32> to vector<8x512xbf16>
    %c0_10 = arith.constant 0 : index
    %c0_11 = arith.constant 0 : index
    %c0_12 = arith.constant 0 : index
    %15 = vector.load %arg5[%c0_10, %c0_11, %c0_12] : memref<1x512x128xbf16, #tpu.memory_space<vmem>>, vector<1x512x128xbf16>
    %16 = vector.shape_cast %15 : vector<1x512x128xbf16> to vector<512x128xbf16>
    %cst_13 = arith.constant dense<0.000000e+00> : vector<8x128xf32>
    %17 = tpu.matmul %14, %16, %cst_13 {dimension_numbers = #tpu.dot_dimension_numbers<[1], [0], [0], [1], [0, 0, 1, 1], [], []>} : vector<8x512xbf16>, vector<512x128xbf16>, vector<8x128xf32> -> vector<8x128xf32>
    %c0_14 = arith.constant 0 : index
    %c0_15 = arith.constant 0 : index
    %c0_16 = arith.constant 0 : index
    %18 = vector.load %arg6[%c0_14, %c0_15, %c0_16] : memref<1x1x128xf32, #tpu.memory_space<vmem>>, vector<1x1x128xf32>
    %19 = vector.shape_cast %18 : vector<1x1x128xf32> to vector<1x128xf32>
    %20 = vector.broadcast %19 : vector<1x128xf32> to vector<8x128xf32>
    %21 = arith.addf %17, %20 : vector<8x128xf32>
    %c0_17 = arith.constant 0 : index
    %c0_18 = arith.constant 0 : index
    %c0_19 = arith.constant 0 : index
    %22 = vector.load %arg7[%c0_17, %c0_18, %c0_19] : memref<1x8x128xf32, #tpu.memory_space<vmem>>, vector<1x8x128xf32>
    %23 = vector.shape_cast %22 : vector<1x8x128xf32> to vector<8x128xf32>
    %24 = vector.shape_cast %21 : vector<8x128xf32> to vector<1x8x128xf32>
    tpu.vector_store %arg7[%c0_17, %c0_18, %c0_19], %24 {strides = array<i32>} : memref<1x8x128xf32, #tpu.memory_space<vmem>>, vector<1x8x128xf32>,
    return
  }
  func.func @transform_0(%arg0: i32, %arg1: i32) -> (i32, i32, i32) {
    %c0_i32 = arith.constant 0 : i32
    %c0_i32_0 = arith.constant 0 : i32
    return %arg0, %arg1, %c0_i32 : i32, i32, i32
  }
  func.func @transform_1(%arg0: i32, %arg1: i32) -> (i32, i32, i32) {
    %c0_i32 = arith.constant 0 : i32
    %c0_i32_0 = arith.constant 0 : i32
    %c0_i32_1 = arith.constant 0 : i32
    return %arg0, %c0_i32, %c0_i32_0 : i32, i32, i32
  }
  func.func @transform_2(%arg0: i32, %arg1: i32) -> (i32, i32, i32) {
    %c0_i32 = arith.constant 0 : i32
    %c0_i32_0 = arith.constant 0 : i32
    %c0_i32_1 = arith.constant 0 : i32
    return %arg0, %c0_i32, %c0_i32_0 : i32, i32, i32
  }
  func.func @transform_3(%arg0: i32, %arg1: i32) -> (i32, i32, i32) {
    %c0_i32 = arith.constant 0 : i32
    %c0_i32_0 = arith.constant 0 : i32
    %c0_i32_1 = arith.constant 0 : i32
    return %arg0, %c0_i32, %c0_i32_0 : i32, i32, i32
  }
  func.func @transform_4(%arg0: i32, %arg1: i32) -> (i32, i32, i32) {
    %c0_i32 = arith.constant 0 : i32
    %c0_i32_0 = arith.constant 0 : i32
    %c0_i32_1 = arith.constant 0 : i32
    return %arg0, %c0_i32, %c0_i32_0 : i32, i32, i32
  }
  func.func @transform_5(%arg0: i32, %arg1: i32) -> (i32, i32, i32) {
    %c0_i32 = arith.constant 0 : i32
    %c0_i32_0 = arith.constant 0 : i32
    return %arg0, %arg1, %c0_i32 : i32, i32, i32
  }
}

</mosaic_0001>

<bundles_post_ra>
// kernel: tpu_custom_call.1
= control target key start
LH: loop header
LB: loop body
LE: loop exit
PB: predicated region body
PF: predicated region fallthrough
CT: control target
= control target key end

     0   :  { %10 = vsyncpa [#allocation3], 0  ;;  %s1119_s0 = inlined_call_operand.hbm [shape: bf16[1,8,128], index: 0, kind: input, shape index: {}]   ;;  %s1120_s1 = inlined_call_operand.hbm [shape: bf16[1,128,512], index: 1, kind: input, shape index: {}]   ;;  %s1121_s2 = inlined_call_operand.vmem [shape: f32[1,1,512], index: 2, kind: input, shape index: {}]   ;;  %s1122_s3 = inlined_call_operand.hbm [shape: bf16[1,512,128], index: 3, kind: input, shape index: {}]   ;;  %s1123_s4 = inlined_call_operand.vmem [shape: f32[1,1,128], index: 4, kind: input, shape index: {}]   ;;  %s1124_s5 = inlined_call_operand.hbm [shape: f32[1,8,128], index: 5, kind: output, shape index: {}]  }
   0x1   :  { %11 = vsyncpa [#allocation6], 0 }
   0x2   :  { %12 = vsyncpa [#allocation4], 0  ;;  %s1026_s18 = smov [#allocation5]   ;;  %s932_s22 = scalar_lea.hbm %s1120_s1, 4096 }
   0x3   :  { %s28_s19 = sshll.u32 %s1026_s18, 4  ;;  %p933_p0 = scmp.ne.s32.totalorder %s1120_s1, %s932_s22  ;;  %s29_s19 = int_to_ptr.vmem [resolvable:$true] %s28_s19 }
   0x4   :  { %p936_p1 = scmp.lt.u32.totalorder %s932_s22, %s1120_s1 }
   0x6   :  { %p938_p2 = pnand %p936_p1, %p933_p0 }
   0x8   :  { %941 = shalt.err (!%p938_p2)
}
   0x9   :  { %s942_s27 = scalar_lea.vmem %s29_s19, 4096  ;;  %p947_p4 = scmp.lt.s32.totalorder %s29_s19, %s29_s19 }
   0xa   :  { %p943_p3 = scmp.ne.s32.totalorder %s29_s19, %s942_s27  ;;  %p948_p5 = scmp.lt.s32.totalorder %s942_s27, %s942_s27 }
   0xc   :  { %p949_p6 = por %p948_p5, %p947_p4 }
   0xe   :  { %p950_p7 = pnand %p949_p6, %p943_p3 }
  0x10   :  { %953 = shalt.err (!%p950_p7)
}
  0x11   :  { %s1027_s28 = smov 256   ;;  %s1028_s29 = smov 16  }
  0x12   :  { %34 = dma.hbm_to_vmem [thread:$0]  %s1120_s1, 4096, %s29_s19, [#allocation6], %s1027_s28, %s1027_s28, %s1028_s29  }
  0x13   :  { %s1029_s7 = smov [#allocation2]   ;;  %s1030_s9 = smov [#allocation7]  }
  0x14   :  { %s19_s8 = sshll.u32 %s1029_s7, 4  ;;  %s42_s10 = sshll.u32 %s1030_s9, 4  ;;  %s20_s8 = int_to_ptr.vmem [resolvable:$true] %s19_s8  ;;  %s43_s10 = int_to_ptr.vmem [resolvable:$true] %s42_s10 }
  0x15   :  { %s954_s13 = scalar_lea.hbm %s1119_s0, 64 }
  0x16   :  { %p955_p8 = scmp.ne.s32.totalorder %s1119_s0, %s954_s13  ;;  %p958_p9 = scmp.lt.u32.totalorder %s954_s13, %s1119_s0 }
  0x18   :  { %p960_p10 = pnand %p958_p9, %p955_p8 }
  0x1a   :  { %963 = shalt.err (!%p960_p10)
}
  0x1b   :  { %s964_s1 = scalar_lea.vmem %s20_s8, 64  ;;  %p969_p12 = scmp.lt.s32.totalorder %s20_s8, %s20_s8 }
  0x1c   :  { %p965_p11 = scmp.ne.s32.totalorder %s20_s8, %s964_s1  ;;  %p970_p13 = scmp.lt.s32.totalorder %s964_s1, %s964_s1 }
  0x1e   :  { %p971_p0 = por %p970_p13, %p969_p12 }
  0x20   :  { %p972_p1 = pnand %p971_p0, %p965_p11 }
  0x22   :  { %975 = shalt.err (!%p972_p1)
}
  0x23   :  { %22 = dma.hbm_to_vmem [thread:$0]  %s1119_s0, 64, %s20_s8, [#allocation3]  }
  0x24   :  { %s976_s22 = scalar_lea.hbm %s1122_s3, 4096 }
  0x25   :  { %p977_p2 = scmp.ne.s32.totalorder %s1122_s3, %s976_s22  ;;  %p980_p3 = scmp.lt.u32.totalorder %s976_s22, %s1122_s3 }
  0x27   :  { %p982_p4 = pnand %p980_p3, %p977_p2 }
  0x29   :  { %985 = shalt.err (!%p982_p4)
}
  0x2a   :  { %s986_s27 = scalar_lea.vmem %s43_s10, 4096  ;;  %p991_p6 = scmp.lt.s32.totalorder %s43_s10, %s43_s10 }
  0x2b   :  { %p987_p5 = scmp.ne.s32.totalorder %s43_s10, %s986_s27  ;;  %p992_p7 = scmp.lt.s32.totalorder %s986_s27, %s986_s27 }
  0x2d   :  { %p993_p8 = por %p992_p7, %p991_p6 }
  0x2f   :  { %p994_p9 = pnand %p993_p8, %p987_p5 }
  0x31   :  { %997 = shalt.err (!%p994_p9)
}
  0x32   :  { %s1031_s0 = smov 64   ;;  %s1032_s28 = smov 4  }
  0x33   :  { %48 = dma.hbm_to_vmem [thread:$0]  %s1122_s3, 4096, %s43_s10, [#allocation6], %s1031_s0, %s1031_s0, %s1032_s28  }
  0x34   :  { %1020 = dma.done.wait [#allocation3], 64  }
  0x35   :  { %1021 = vsyncadd [#allocation3], 4294967232 }
  0x36   :  { %1022 = dma.done.wait [#allocation6], 8192  }
  0x37   :  { %1023 = vsyncadd [#allocation6], 4294959104  ;;  %v1033_v0 = vmov 0   ;;  %v852_v1 = vld [vmem:[#allocation5 + $0x4] ss:$16 sps:$4 sm:$0xff]   ;;  %v904_v38 = vld [vmem:[#allocation7 + $0x48] sm:$0xff]  }
  0x38   :  { %308 = vmatprep.mubr.bf16.mxu0 %v1033_v0  ;;  %349 = vmatprep.mubr.bf16.mxu1 %v1033_v0  ;;  %v854_v2 = vld [vmem:[#allocation5 + $0xc] ss:$16 sps:$4 sm:$0xff]   ;;  %v856_v3 = vld [vmem:[#allocation5] ss:$16 sps:$4 sm:$0xff]   ;;  %v857_v4 = vld [vmem:[#allocation5 + $0x8] ss:$16 sps:$4 sm:$0xff]  }
  0x39   :  { %276 = vmatprep.subr.bf16.mxu0 %v852_v1  ;;  %317 = vmatprep.subr.bf16.mxu1 %v854_v2  ;;  %v858_v5 = vld [vmem:[#allocation5 + $0x24] ss:$16 sps:$4 sm:$0xff]   ;;  %v860_v6 = vld [vmem:[#allocation5 + $0x2c] ss:$16 sps:$4 sm:$0xff]   ;;  %v862_v7 = vld [vmem:[#allocation5 + $0x20] ss:$16 sps:$4 sm:$0xff]   ;;  %v96_v2 = vlaneseq }
  0x3a   :  { %277 = vmatpush1.bf16.msra.mxu0 %v856_v3  ;;  %318 = vmatpush1.bf16.msra.mxu1 %v857_v4  ;;  %v863_v8 = vld [vmem:[#allocation5 + $0x28] ss:$16 sps:$4 sm:$0xff]   ;;  %v864_v9 = vld [vmem:[#allocation5 + $0x44] ss:$16 sps:$4 sm:$0xff]   ;;  %v866_v10 = vld [vmem:[#allocation5 + $0x4c] ss:$16 sps:$4 sm:$0xff]  }
  0x3b   :  { %278 = vmatprep.subr.bf16.mxu0 %v858_v5  ;;  %319 = vmatprep.subr.bf16.mxu1 %v860_v6  ;;  %v868_v11 = vld [vmem:[#allocation5 + $0x40] ss:$16 sps:$4 sm:$0xff]   ;;  %v869_v12 = vld [vmem:[#allocation5 + $0x48] ss:$16 sps:$4 sm:$0xff]   ;;  %v870_v13 = vld [vmem:[#allocation5 + $0x64] ss:$16 sps:$4 sm:$0xff]  }
  0x3c   :  { %v872_v14 = vld [vmem:[#allocation5 + $0x6c] ss:$16 sps:$4 sm:$0xff]   ;;  %v874_v15 = vld [vmem:[#allocation5 + $0x60] ss:$16 sps:$4 sm:$0xff]   ;;  %v875_v16 = vld [vmem:[#allocation5 + $0x68] ss:$16 sps:$4 sm:$0xff]  }
  0x3d   :  { %v876_v17 = vld [vmem:[#allocation5 + $0x84] ss:$16 sps:$4 sm:$0xff]   ;;  %v878_v18 = vld [vmem:[#allocation5 + $0x8c] ss:$16 sps:$4 sm:$0xff]   ;;  %v880_v19 = vld [vmem:[#allocation5 + $0x80] ss:$16 sps:$4 sm:$0xff]  }
  0x3e   :  { %279 = vmatpush1.bf16.msra.mxu0 %v862_v7  ;;  %320 = vmatpush1.bf16.msra.mxu1 %v863_v8  ;;  %v881_v20 = vld [vmem:[#allocation5 + $0x88] ss:$16 sps:$4 sm:$0xff]   ;;  %v882_v21 = vld [vmem:[#allocation5 + $0xa4] ss:$16 sps:$4 sm:$0xff]   ;;  %v884_v22 = vld [vmem:[#allocation5 + $0xac] ss:$16 sps:$4 sm:$0xff]  }
  0x3f   :  { %280 = vmatprep.subr.bf16.mxu0 %v864_v9  ;;  %321 = vmatprep.subr.bf16.mxu1 %v866_v10  ;;  %v886_v23 = vld [vmem:[#allocation5 + $0xa0] ss:$16 sps:$4 sm:$0xff]   ;;  %v887_v24 = vld [vmem:[#allocation5 + $0xa8] ss:$16 sps:$4 sm:$0xff]   ;;  %v888_v25 = vld [vmem:[#allocation5 + $0xc4] ss:$16 sps:$4 sm:$0xff]  }
  0x40   :  { %v890_v26 = vld [vmem:[#allocation5 + $0xcc] ss:$16 sps:$4 sm:$0xff]   ;;  %v892_v27 = vld [vmem:[#allocation5 + $0xc0] ss:$16 sps:$4 sm:$0xff]   ;;  %v893_v28 = vld [vmem:[#allocation5 + $0xc8] ss:$16 sps:$4 sm:$0xff]  }
  0x41   :  { %v894_v29 = vld [vmem:[#allocation5 + $0xe4] ss:$16 sps:$4 sm:$0xff]   ;;  %v896_v30 = vld [vmem:[#allocation5 + $0xec] ss:$16 sps:$4 sm:$0xff]   ;;  %v898_v31 = vld [vmem:[#allocation5 + $0xe0] ss:$16 sps:$4 sm:$0xff]  }
  0x42   :  { %281 = vmatpush1.bf16.msra.mxu0 %v868_v11  ;;  %322 = vmatpush1.bf16.msra.mxu1 %v869_v12  ;;  %v899_v32 = vld [vmem:[#allocation5 + $0xe8] ss:$16 sps:$4 sm:$0xff]   ;;  %v900_v33 = vld [vmem:[#allocation7 + $0x40] sm:$0xff]   ;;  %v61_v35 = vld [vmem:[#allocation2] sm:$0xf]  ;;  %v97_v3 = vshrl.u32 %v96_v2, 7 }
  0x43   :  { %282 = vmatprep.subr.bf16.mxu0 %v870_v13  ;;  %323 = vmatprep.subr.bf16.mxu1 %v872_v14  ;;  %v901_v34 = vld [vmem:[#allocation7 + $0xc0] sm:$0xff]   ;;  %v905_v39 = vld [vmem:[#allocation7 + $0xc8] sm:$0xff]   ;;  %v908_v42 = vld [vmem:[#allocation7 + $0x50] sm:$0xff]   ;;  %s1034_s8 = smov [#allocation8]  }
  0x44   :  { %v902_v36 = vld [vmem:[#allocation7] sm:$0xff]   ;;  %v906_v40 = vld [vmem:[#allocation7 + $0x8] sm:$0xff]   ;;  %v909_v43 = vld [vmem:[#allocation7 + $0xd0] sm:$0xff]   ;;  %v98_v4 = vsub.s32 0, %v97_v3  ;;  %v106_v5 = vsub.s32 2, %v97_v3  ;;  %v102_v7 = vsub.s32 1, %v97_v3 }
  0x45   :  { %v903_v37 = vld [vmem:[#allocation7 + $0x80] sm:$0xff]   ;;  %v907_v41 = vld [vmem:[#allocation7 + $0x88] sm:$0xff]   ;;  %v910_v44 = vld [vmem:[#allocation7 + $0x10] sm:$0xff]   ;;  %v110_v8 = vsub.s32 3, %v97_v3  ;;  %s724_s9 = sshll.u32 %s1034_s8, 4  ;;  %s725_s9 = int_to_ptr.vmem [resolvable:$true] %s724_s9 }
  0x46   :  { %283 = vmatpush1.bf16.msra.mxu0 %v874_v15  ;;  %324 = vmatpush1.bf16.msra.mxu1 %v875_v16  ;;  %v911_v45 = vld [vmem:[#allocation7 + $0x90] sm:$0xff]   ;;  %v912_v46 = vld [vmem:[#allocation7 + $0x58] sm:$0xff]   ;;  %v916_v50 = vld [vmem:[#allocation7 + $0x60] sm:$0xff]   ;;  %s998_s10 = scalar_lea.vmem %s725_s9, 128  ;;  %p1003_p11 = scmp.lt.s32.totalorder %s725_s9, %s725_s9 }
  0x47   :  { %284 = vmatprep.subr.bf16.mxu0 %v876_v17  ;;  %325 = vmatprep.subr.bf16.mxu1 %v878_v18  ;;  %v913_v47 = vld [vmem:[#allocation7 + $0xd8] sm:$0xff]   ;;  %v917_v51 = vld [vmem:[#allocation7 + $0xe0] sm:$0xff]   ;;  %v920_v54 = vld [vmem:[#allocation7 + $0x68] sm:$0xff]   ;;  %p999_p10 = scmp.ne.s32.totalorder %s725_s9, %s998_s10  ;;  %p1004_p12 = scmp.lt.s32.totalorder %s998_s10, %s998_s10 }
  0x48   :  { %v914_v48 = vld [vmem:[#allocation7 + $0x18] sm:$0xff]   ;;  %v918_v52 = vld [vmem:[#allocation7 + $0x20] sm:$0xff]   ;;  %v921_v55 = vld [vmem:[#allocation7 + $0xe8] sm:$0xff]  }
  0x49   :  { %v915_v49 = vld [vmem:[#allocation7 + $0x98] sm:$0xff]   ;;  %v919_v53 = vld [vmem:[#allocation7 + $0xa0] sm:$0xff]   ;;  %v922_v56 = vld [vmem:[#allocation7 + $0x28] sm:$0xff]   ;;  %p1005_p13 = por %p1004_p12, %p1003_p11 }
  0x4a   :  { %285 = vmatpush1.bf16.msra.mxu0 %v880_v19  ;;  %326 = vmatpush1.bf16.msra.mxu1 %v881_v20  ;;  %v923_v57 = vld [vmem:[#allocation7 + $0xa8] sm:$0xff]   ;;  %v924_v58 = vld [vmem:[#allocation7 + $0x70] sm:$0xff]   ;;  %v928_v62 = vld [vmem:[#allocation7 + $0x78] sm:$0xff]  }
  0x4b   :  { %286 = vmatprep.subr.bf16.mxu0 %v882_v21  ;;  %327 = vmatprep.subr.bf16.mxu1 %v884_v22  ;;  %v925_v59 = vld [vmem:[#allocation7 + $0xf0] sm:$0xff]   ;;  %v929_v63 = vld [vmem:[#allocation7 + $0xf8] sm:$0xff]   ;;  %p1006_p0 = pnand %p1005_p13, %p999_p10 }
  0x4c   :  { %v926_v60 = vld [vmem:[#allocation7 + $0x30] sm:$0xff]   ;;  %v930_v0 = vld [vmem:[#allocation7 + $0x38] sm:$0xff]  }
  0x4d   :  { %v927_v61 = vld [vmem:[#allocation7 + $0xb0] sm:$0xff]   ;;  %v931_v1 = vld [vmem:[#allocation7 + $0xb8] sm:$0xff]  }
  0x4e   :  { %287 = vmatpush1.bf16.msra.mxu0 %v886_v23  ;;  %328 = vmatpush1.bf16.msra.mxu1 %v887_v24  ;;  %v94_v6 = vld [vmem:[%s1121_s2] sm:$0xf] }
  0x4f   :  { %288 = vmatprep.subr.bf16.mxu0 %v888_v25  ;;  %329 = vmatprep.subr.bf16.mxu1 %v890_v26  ;;  %v99_v9 = vrot.slane %v94_v6, %v98_v4  ;;  %v107_v10 = vrot.slane %v94_v6, %v106_v5  ;;  %v103_v11 = vrot.slane %v94_v6, %v102_v7 }
  0x50   :  { %v111_v12 = vrot.slane %v94_v6, %v110_v8 }
  0x52   :  { %289 = vmatpush1.bf16.msra.mxu0 %v892_v27  ;;  %330 = vmatpush1.bf16.msra.mxu1 %v893_v28 }
  0x53   :  { %290 = vmatprep.subr.bf16.mxu0 %v894_v29  ;;  %331 = vmatprep.subr.bf16.mxu1 %v896_v30 }
  0x56   :  { %291 = vmatpush1.bf16.msra.mxu0 %v898_v31  ;;  %332 = vmatpush1.bf16.msra.mxu1 %v899_v32 }
  0x57   :  { %799 = vmatprep.subr.bf16.mxu0 %v900_v33  ;;  %821 = vmatprep.subr.bf16.mxu1 %v901_v34 }
  0x59   :  { %309 = vmatmul.mubr.bf16.vlgmr.msra.gmra.mrb[0].mxu0 %v61_v35  ;;  %350 = vmatmul.mubr.bf16.vlgmr.msra.gmra.mrb[0].mxu1 %v61_v35 }
  0x5a   :  { %800 = vmatpush3.bf16.msra.mxu0 %v902_v36  ;;  %822 = vmatpush3.bf16.msra.mxu1 %v903_v37 }
  0x5b   :  { %801 = vmatprep.subr.bf16.mxu0 %v904_v38  ;;  %823 = vmatprep.subr.bf16.mxu1 %v905_v39  ;;  %v766_v39 = vld [vmem:[%s1123_s4] ss:$0 sm:$0xff] }
  0x5e   :  { %802 = vmatpush3.bf16.msra.mxu0 %v906_v40  ;;  %824 = vmatpush3.bf16.msra.mxu1 %v907_v41 }
  0x5f   :  { %803 = vmatprep.subr.bf16.mxu0 %v908_v42  ;;  %825 = vmatprep.subr.bf16.mxu1 %v909_v43 }
  0x62   :  { %804 = vmatpush3.bf16.msra.mxu0 %v910_v44  ;;  %826 = vmatpush3.bf16.msra.mxu1 %v911_v45 }
  0x63   :  { %805 = vmatprep.subr.bf16.mxu0 %v912_v46  ;;  %827 = vmatprep.subr.bf16.mxu1 %v913_v47 }
  0x66   :  { %806 = vmatpush3.bf16.msra.mxu0 %v914_v48  ;;  %828 = vmatpush3.bf16.msra.mxu1 %v915_v49 }
  0x67   :  { %807 = vmatprep.subr.bf16.mxu0 %v916_v50  ;;  %829 = vmatprep.subr.bf16.mxu1 %v917_v51 }
  0x6a   :  { %808 = vmatpush3.bf16.msra.mxu0 %v918_v52  ;;  %830 = vmatpush3.bf16.msra.mxu1 %v919_v53 }
  0x6b   :  { %809 = vmatprep.subr.bf16.mxu0 %v920_v54  ;;  %831 = vmatprep.subr.bf16.mxu1 %v921_v55 }
  0x6e   :  { %810 = vmatpush3.bf16.msra.mxu0 %v922_v56  ;;  %832 = vmatpush3.bf16.msra.mxu1 %v923_v57 }
  0x6f   :  { %811 = vmatprep.subr.bf16.mxu0 %v924_v58  ;;  %833 = vmatprep.subr.bf16.mxu1 %v925_v59 }
  0x72   :  { %812 = vmatpush3.bf16.msra.mxu0 %v926_v60  ;;  %834 = vmatpush3.bf16.msra.mxu1 %v927_v61 }
  0x73   :  { %813 = vmatprep.subr.bf16.mxu0 %v928_v62  ;;  %835 = vmatprep.subr.bf16.mxu1 %v929_v63 }
  0x76   :  { %814 = vmatpush3.bf16.msra.mxu0 %v930_v0  ;;  %836 = vmatpush3.bf16.msra.mxu1 %v931_v1 }
 0x12c   :  { %v310_v13 = vpop.f32.mrb[0].mxu0  ;;  %v351_v14 = vpop.f32.mrb[0].mxu1 }
 0x12d   :  { %v311_v15 = vadd.f32 %v310_v13, %v99_v9  ;;  %v352_v16 = vadd.f32 %v351_v14, %v107_v10  ;;  %v312_v17 = vpop.f32.mrb[1].mxu0  ;;  %v353_v18 = vpop.f32.mrb[1].mxu1 }
 0x12e   :  { %v313_v19 = vadd.f32 %v312_v17, %v103_v11  ;;  %v354_v20 = vadd.f32 %v353_v18, %v111_v12  ;;  %v314_v21 = vpop.f32.mrb[2].mxu0  ;;  %v355_v22 = vpop.f32.mrb[2].mxu1 }
 0x12f   :  { %vm358_vm0 = vcmp.ge.f32.partialorder %v311_v15, 0.0  ;;  %v362_v23 = vmul.f32 0.01, %v311_v15  ;;  %vm360_vm1 = vcmp.ge.f32.partialorder %v352_v16, 0.0  ;;  %v364_v24 = vmul.f32 0.01, %v352_v16 }
 0x130   :  { %vm359_vm2 = vcmp.ge.f32.partialorder %v313_v19, 0.0  ;;  %v363_v25 = vmul.f32 0.01, %v313_v19  ;;  %vm361_vm3 = vcmp.ge.f32.partialorder %v354_v20, 0.0  ;;  %v365_v26 = vmul.f32 0.01, %v354_v20 }
 0x131   :  { %v366_v27 = vsel %vm358_vm0, %v311_v15, %v362_v23  ;;  %v368_v28 = vsel %vm360_vm1, %v352_v16, %v364_v24  ;;  %v315_v29 = vpop.f32.mrb[3].mxu0  ;;  %v356_v30 = vpop.f32.mrb[3].mxu1 }
 0x132   :  { %v367_v31 = vsel %vm359_vm2, %v313_v19, %v363_v25  ;;  %v369_v32 = vsel %vm361_vm3, %v354_v20, %v365_v26  ;;  %v370_v35 = vpack.c.bf16 %v366_v27, %v366_v27  ;;  %v372_v36 = vpack.c.bf16 %v368_v28, %v368_v28 }
 0x133   :  { %v371_v33 = vpack.c.bf16 %v367_v31, %v367_v31  ;;  %v373_v34 = vpack.c.bf16 %v369_v32, %v369_v32 }
 0x135   :  { %669 = vmatprep.mubr.bf16.mxu0 %v371_v33  ;;  %709 = vmatprep.mubr.bf16.mxu1 %v373_v34 }
 0x136   :  { %670 = vmatmul.mubr.bf16.vlgmr.msra.gmra.mrb[4].mxu0 %v370_v35  ;;  %710 = vmatmul.mubr.bf16.vlgmr.msra.gmra.mrb[4].mxu1 %v372_v36 }
 0x209   :  { %v815_v37 = vpop.f32.mrb[4].mxu0  ;;  %v837_v38 = vpop.f32.mrb[4].mxu1 }
 0x20a   :  { %v816_v40 = vpop.f32.mrb[5].mxu0  ;;  %v838_v41 = vpop.f32.mrb[5].mxu1 }
 0x20b   :  { %v817_v42 = vadd.f32 %v816_v40, %v815_v37  ;;  %v839_v43 = vadd.f32 %v838_v41, %v837_v38  ;;  %v818_v44 = vpop.f32.mrb[6].mxu0  ;;  %v840_v45 = vpop.f32.mrb[6].mxu1 }
 0x20c   :  { %v819_v46 = vpop.f32.mrb[7].mxu0  ;;  %v841_v47 = vpop.f32.mrb[7].mxu1 }
 0x20d   :  { %v672_v48 = vadd.f32 %v817_v42, %v766_v39 }
 0x20f   :  { %v712_v49 = vadd.f32 %v839_v43, %v672_v48 }
 0x211   :  { %717 = vst [vmem:[#allocation8] sm:$0xff] %v712_v49 }
 0x212   :  { %1009 = shalt.err (!%p1006_p0)
}
 0x213   :  { %s1010_s12 = scalar_lea.hbm %s1124_s5, 128 }
 0x214   :  { %p1011_p1 = scmp.ne.s32.totalorder %s1124_s5, %s1010_s12  ;;  %p1014_p2 = scmp.lt.u32.totalorder %s1010_s12, %s1124_s5 }
 0x216   :  { %p1016_p3 = pnand %p1014_p2, %p1011_p1 }
 0x218   :  { %1019 = shalt.err (!%p1016_p3)
}
 0x219   :  { %727 = dma.vmem_to_hbm [thread:$0]  %s725_s9, 128, %s1124_s5, [#allocation4]  }
 0x21a   :  { %1024 = dma.done.wait [#allocation4], 128  }
 0x21b   :  { %1025 = vsyncadd [#allocation4], 4294967168 }
 0x21c   :  { %731 = vsyncpa [#allocation3], 1 }
 0x21d   :  { %732 = vsyncpa [#allocation6], 1 }
 0x21e   :  { %733 = vsyncpa [#allocation4], 1 }

</bundles_post_ra>
